<compile_context>
chip_gen: v7x
topology: tpu7x:2x2x1
jax: 0.10.0
libtpu: 0.0.40
codegen_flags: <defaults>
</compile_context>

<pallas_src>
import functools
import math

import jax
import jax.numpy as jnp
from jax.experimental import pallas as pl
from jax.experimental.pallas import tpu as pltpu


def _mha_kernel(nheads, seq_len, x_ref, win_ref, bin_ref, wout_ref, bout_ref,
                gamma_ref, beta_ref, hm_ref, hmt_ref, out_ref, w_ref):
    BT, D = x_ref.shape            # BT = Bb * T
    T = seq_len
    Bb = BT // T
    S = T - 1
    Dh = D // nheads
    scale = 1.0 / math.sqrt(Dh)
    neg_big = jnp.float32(-1e30)

    x = x_ref[...]                                                    # (Bb*T, D)

    # Fused in-projection of q/k/v for every token of every batch element:
    # one (Bb*T, D) @ (D, 3D) MXU matmul + one bias add.
    xp = jnp.dot(x, win_ref[...],
                 preferred_element_type=jnp.float32) + bin_ref[...]   # (Bb*T, 3D)

    hm = hm_ref[...]                                                  # (D, H) block-diag 0/1
    hmt = hmt_ref[...]                                                # (H, D)

    # Row T-1 of each batch's tile is the query token; it is NOT a valid key.
    key_valid = jax.lax.broadcasted_iota(jnp.int32, (T, nheads), 0) < S   # (T, H)

    attn_rows = []
    for b in range(Bb):            # static unroll; Bb is small by construction
        r0 = b * T
        q = xp[r0 + T - 1:r0 + T, 0:D] * scale                        # (1, D)  scale hoisted
        k = xp[r0:r0 + T, D:2 * D]                                    # (T, D)
        v = xp[r0:r0 + T, 2 * D:3 * D]                                # (T, D)

        # Per-head scores for all heads at once: (q*k) summed within each head's
        # Dh-column block via the block-diagonal head mask (MXU; no 32-lane slices).
        s = jnp.dot(q * k, hm, preferred_element_type=jnp.float32)    # (T, H)
        s = jnp.where(key_valid, s, neg_big)

        # Softmax over the key axis (sublanes).
        m = jnp.max(s, axis=0, keepdims=True)                         # (1, H)
        e = jnp.exp(s - m)                                            # (T, H); masked row -> 0
        l = jnp.sum(e, axis=0, keepdims=True)                         # (1, H)
        w = e * pl.reciprocal(l, approx=True)                         # (T, H)

        # Expand per-head weights back to D lanes (MXU) and weight the values.
        w_exp = jnp.dot(w, hmt, preferred_element_type=jnp.float32)   # (T, D)
        attn_rows.append(jnp.sum(w_exp * v, axis=0, keepdims=True))   # (1, D)

        # Head-averaged attention weights, lane-broadcast so the store is a full
        # (lane-dense) vst; the wrapper slices back to (B, 1, S).
        w_avg = jnp.mean(w, axis=1, keepdims=True)                    # (T, 1)
        w_ref[r0:r0 + T, :] = jnp.broadcast_to(w_avg, (T, w_ref.shape[1]))

    attn = attn_rows[0] if Bb == 1 else jnp.concatenate(attn_rows, axis=0)   # (Bb, D)
    attn = jnp.dot(attn, wout_ref[...],
                   preferred_element_type=jnp.float32) + bout_ref[...]       # (Bb, D)

    gamma = gamma_ref[...]                                            # (1, D)
    beta = beta_ref[...]                                              # (1, D)
    for b in range(Bb):
        r0 = b * T
        y = x[r0:r0 + T, :] + attn[b:b + 1, :]                        # residual broadcast (T, D)
        mean = jnp.mean(y, axis=-1, keepdims=True)
        cent = y - mean
        var = jnp.mean(cent * cent, axis=-1, keepdims=True)
        yn = cent * jax.lax.rsqrt(var + 1e-5)
        out_ref[r0:r0 + T, :] = (yn * gamma + beta).astype(out_ref.dtype)


def multihead_attn_forward(x, mask, in_proj_w, in_proj_b, out_proj_w,
                           out_proj_b, ln_w, ln_b, nheads):
    """x: (B, T, D) f32. Returns (out (B, T, D), attn_w (B, 1, T-1)).

    `mask` is accepted for API parity but ignored: the original PyTorch forward
    tiles it yet never passes it to nn.MultiheadAttention.
    """
    del mask  # unused by the original module's attention call
    B, T, D = x.shape
    S = T - 1
    assert D % nheads == 0
    Dh = D // nheads
    assert in_proj_w.shape == (3 * D, D)
    assert out_proj_w.shape == (D, D)

    # --- batch blocking: fold Bb batch elements into one grid step, keep the
    # grid >= 2 steps when possible so v7x's two TensorCores both get work.
    if B >= 2:
        Bb = min(-(-B // 2), 8)          # ceil(B/2), capped (static unroll bound)
    else:
        Bb = 1
    nblk = -(-B // Bb)
    if (Bb * T) % 8 != 0 and nblk > 1:   # keep the block's 2nd-minor dim sublane-aligned
        Bb, nblk = B, 1
    Bpad = Bb * nblk
    if Bpad != B:
        x = jnp.concatenate([x, jnp.zeros((Bpad - B, T, D), x.dtype)], axis=0)

    x2d = x.reshape(Bpad * T, D).astype(jnp.float32)        # free layout reshape

    win_t = jnp.transpose(in_proj_w).astype(jnp.float32)    # (D, 3D)
    bin2 = in_proj_b.reshape(1, 3 * D).astype(jnp.float32)
    wout_t = jnp.transpose(out_proj_w).astype(jnp.float32)  # (D, D)
    bout2 = out_proj_b.reshape(1, D).astype(jnp.float32)
    gamma = ln_w.reshape(1, D).astype(jnp.float32)
    beta = ln_b.reshape(1, D).astype(jnp.float32)

    # Block-diagonal head masks: hm[d, h] = 1 iff embedding lane d belongs to head h.
    head_of_lane = jnp.arange(D, dtype=jnp.int32) // Dh
    hm = (head_of_lane[:, None] ==
          jnp.arange(nheads, dtype=jnp.int32)[None, :]).astype(jnp.float32)   # (D, H)
    hmt = jnp.transpose(hm)                                                   # (H, D)

    WPAD = 128   # lane-dense width for the attention-weight output slab

    kernel = functools.partial(_mha_kernel, nheads, T)

    def _const_spec(shape):
        # Weight blocks never change across the grid -> single-buffer them.
        return pl.BlockSpec(shape, lambda i: (0, 0), pipeline_mode=pl.Buffered(1))

    out2d, w2d = pl.pallas_call(
        kernel,
        out_shape=(
            jax.ShapeDtypeStruct((Bpad * T, D), jnp.float32),
            jax.ShapeDtypeStruct((Bpad * T, WPAD), jnp.float32),
        ),
        grid_spec=pltpu.PrefetchScalarGridSpec(
            num_scalar_prefetch=0,
            grid=(nblk,),
            in_specs=[
                pl.BlockSpec((Bb * T, D), lambda i: (i, 0)),   # x slab (per batch block)
                _const_spec((D, 3 * D)),                       # in_proj_weight^T
                _const_spec((1, 3 * D)),                       # in_proj_bias
                _const_spec((D, D)),                           # out_proj_weight^T
                _const_spec((1, D)),                           # out_proj_bias
                _const_spec((1, D)),                           # LayerNorm weight
                _const_spec((1, D)),                           # LayerNorm bias
                _const_spec((D, nheads)),                      # head mask
                _const_spec((nheads, D)),                      # head mask^T
            ],
            out_specs=[
                pl.BlockSpec((Bb * T, D), lambda i: (i, 0)),     # normed output slab
                pl.BlockSpec((Bb * T, WPAD), lambda i: (i, 0)),  # attn-weight slab
            ],
        ),
        compiler_params=pltpu.CompilerParams(
            dimension_semantics=("parallel",),   # batch blocks are independent
        ),
    )(x2d, win_t, bin2, wout_t, bout2, gamma, beta, hm, hmt)

    out = out2d[:B * T].reshape(B, T, D)
    # Column 0 of each row of the weight slab holds the head-averaged attention
    # weight of that key position; drop the masked query row and any padded batches.
    attn_w = w2d.reshape(Bpad, T, WPAD)[:B, :S, 0].reshape(B, 1, S)
    return out, attn_w


def _mha_ref(x, in_proj_w, in_proj_b, out_proj_w, out_proj_b, ln_w, ln_b, nheads):
    """Pure-JAX reference matching nn.MultiheadAttention + LayerNorm semantics."""
    B, T, D = x.shape
    S = T - 1
    Dh = D // nheads
    q = x[:, -1:, :]                                 # (B, 1, D)
    kv = x[:, :-1, :]                                # (B, S, D)
    wq, wk, wv = in_proj_w[:D], in_proj_w[D:2 * D], in_proj_w[2 * D:]
    bq, bk, bv = in_proj_b[:D], in_proj_b[D:2 * D], in_proj_b[2 * D:]
    qp = q @ wq.T + bq
    kp = kv @ wk.T + bk
    vp = kv @ wv.T + bv
    qh = qp.reshape(B, 1, nheads, Dh).transpose(0, 2, 1, 3)   # (B, H, 1, Dh)
    kh = kp.reshape(B, S, nheads, Dh).transpose(0, 2, 1, 3)   # (B, H, S, Dh)
    vh = vp.reshape(B, S, nheads, Dh).transpose(0, 2, 1, 3)
    scores = jnp.einsum('bhqd,bhkd->bhqk', qh, kh) / math.sqrt(Dh)
    w = jax.nn.softmax(scores, axis=-1)                       # (B, H, 1, S)
    o = jnp.einsum('bhqk,bhkd->bhqd', w, vh)
    o = o.transpose(0, 2, 1, 3).reshape(B, 1, D)
    attn_x = o @ out_proj_w.T + out_proj_b                    # (B, 1, D)
    w_avg = w.mean(axis=1)                                    # (B, 1, S)
    y = x + attn_x
    mean = y.mean(-1, keepdims=True)
    cent = y - mean
    var = (cent * cent).mean(-1, keepdims=True)
    out = cent * jax.lax.rsqrt(var + 1e-5) * ln_w + ln_b
    return out, w_avg


if __name__ == "__main__":
    BATCH = 2
    SEQ = 8            # T; the last token is the query, the first T-1 are keys/values
    INPUT_SIZE = 128   # embed dim (lane-dense)
    HIDDEN_SIZE = 64   # unused by the module's forward (kept only for parity)
    NHEADS = 4         # head dim = 32

    key = jax.random.PRNGKey(0)
    k = jax.random.split(key, 7)

    bound = 1.0 / math.sqrt(INPUT_SIZE)
    x = jax.random.normal(k[0], (BATCH, SEQ, INPUT_SIZE), jnp.float32)
    in_proj_w = jax.random.uniform(k[1], (3 * INPUT_SIZE, INPUT_SIZE), jnp.float32, -bound, bound)
    in_proj_b = jax.random.uniform(k[2], (3 * INPUT_SIZE,), jnp.float32, -bound, bound)
    out_proj_w = jax.random.uniform(k[3], (INPUT_SIZE, INPUT_SIZE), jnp.float32, -bound, bound)
    out_proj_b = jax.random.uniform(k[4], (INPUT_SIZE,), jnp.float32, -bound, bound)
    ln_w = 1.0 + 0.1 * jax.random.normal(k[5], (INPUT_SIZE,), jnp.float32)
    ln_b = 0.1 * jax.random.normal(k[6], (INPUT_SIZE,), jnp.float32)
    # The original forward tiles a mask but never feeds it to the attention op.
    mask = jnp.zeros((1, SEQ - 1), jnp.float32)

    out, attn_w = multihead_attn_forward(
        x, mask, in_proj_w, in_proj_b, out_proj_w, out_proj_b, ln_w, ln_b, NHEADS)
    jax.block_until_ready((out, attn_w))

    out_ref, w_ref = _mha_ref(
        x, in_proj_w, in_proj_b, out_proj_w, out_proj_b, ln_w, ln_b, NHEADS)

    assert out.shape == (BATCH, SEQ, INPUT_SIZE)
    assert attn_w.shape == (BATCH, 1, SEQ - 1)
    # Tolerances account for MXU default-precision matmuls and the EUP
    # approximate reciprocal used in the softmax denominator.
    err_out = float(jnp.max(jnp.abs(out - out_ref)))
    err_w = float(jnp.max(jnp.abs(attn_w - w_ref)))
    assert jnp.allclose(out, out_ref, atol=5e-3, rtol=5e-3), err_out
    assert jnp.allclose(attn_w, w_ref, atol=5e-3, rtol=5e-3), err_w
    # Attention weights must (approximately) sum to 1 over the keys.
    assert jnp.allclose(jnp.sum(attn_w, axis=-1), 1.0, atol=5e-3)

    print("KERNEL_OK")
</pallas_src>

<mosaic_0001>
module attributes {stable_mosaic.version = 11 : i64} {
  func.func @_mha_kernel(%arg0: i32, %arg1: memref<8x128xf32, #tpu.memory_space<vmem>>, %arg2: memref<128x384xf32, #tpu.memory_space<vmem>>, %arg3: memref<1x384xf32, #tpu.memory_space<vmem>>, %arg4: memref<128x128xf32, #tpu.memory_space<vmem>>, %arg5: memref<1x128xf32, #tpu.memory_space<vmem>>, %arg6: memref<1x128xf32, #tpu.memory_space<vmem>>, %arg7: memref<1x128xf32, #tpu.memory_space<vmem>>, %arg8: memref<128x4xf32, #tpu.memory_space<vmem>>, %arg9: memref<4x128xf32, #tpu.memory_space<vmem>>, %arg10: memref<8x128xf32, #tpu.memory_space<vmem>>, %arg11: memref<8x128xf32, #tpu.memory_space<vmem>>) attributes {dimension_semantics = [#tpu.dimension_semantics<parallel>], iteration_bounds = array<i64: 2>, scalar_prefetch = 0 : i64, scratch_operands = 0 : i64, tpu.core_type = #tpu.core_type<tc>, window_params = [{transform_indices = @transform_0, window_bounds = array<i64: 8, 128>}, {pipeline_mode = #tpu.pipeline_mode<synchronous>, transform_indices = @transform_1, window_bounds = array<i64: 128, 384>}, {pipeline_mode = #tpu.pipeline_mode<synchronous>, transform_indices = @transform_2, window_bounds = array<i64: 1, 384>}, {pipeline_mode = #tpu.pipeline_mode<synchronous>, transform_indices = @transform_3, window_bounds = array<i64: 128, 128>}, {pipeline_mode = #tpu.pipeline_mode<synchronous>, transform_indices = @transform_4, window_bounds = array<i64: 1, 128>}, {pipeline_mode = #tpu.pipeline_mode<synchronous>, transform_indices = @transform_5, window_bounds = array<i64: 1, 128>}, {pipeline_mode = #tpu.pipeline_mode<synchronous>, transform_indices = @transform_6, window_bounds = array<i64: 1, 128>}, {pipeline_mode = #tpu.pipeline_mode<synchronous>, transform_indices = @transform_7, window_bounds = array<i64: 128, 4>}, {pipeline_mode = #tpu.pipeline_mode<synchronous>, transform_indices = @transform_8, window_bounds = array<i64: 4, 128>}, {transform_indices = @transform_9, window_bounds = array<i64: 8, 128>}, {transform_indices = @transform_10, window_bounds = array<i64: 8, 128>}]} {
    %c0 = arith.constant 0 : index
    %c0_0 = arith.constant 0 : index
    %0 = vector.load %arg1[%c0, %c0_0] : memref<8x128xf32, #tpu.memory_space<vmem>>, vector<8x128xf32>
    %c0_1 = arith.constant 0 : index
    %c0_2 = arith.constant 0 : index
    %1 = vector.load %arg2[%c0_1, %c0_2] : memref<128x384xf32, #tpu.memory_space<vmem>>, vector<128x384xf32>
    %cst = arith.constant dense<0.000000e+00> : vector<8x384xf32>
    %2 = tpu.matmul %0, %1, %cst {dimension_numbers = #tpu.dot_dimension_numbers<[1], [0], [0], [1], [0, 0, 1, 1], [], []>} : vector<8x128xf32>, vector<128x384xf32>, vector<8x384xf32> -> vector<8x384xf32>
    %c0_3 = arith.constant 0 : index
    %c0_4 = arith.constant 0 : index
    %3 = vector.load %arg3[%c0_3, %c0_4] : memref<1x384xf32, #tpu.memory_space<vmem>>, vector<1x384xf32>
    %4 = vector.broadcast %3 : vector<1x384xf32> to vector<8x384xf32>
    %5 = arith.addf %2, %4 : vector<8x384xf32>
    %c0_5 = arith.constant 0 : index
    %c0_6 = arith.constant 0 : index
    %6 = vector.load %arg8[%c0_5, %c0_6] : memref<128x4xf32, #tpu.memory_space<vmem>>, vector<128x4xf32>
    %c0_7 = arith.constant 0 : index
    %c0_8 = arith.constant 0 : index
    %7 = vector.load %arg9[%c0_7, %c0_8] : memref<4x128xf32, #tpu.memory_space<vmem>>, vector<4x128xf32>
    %8 = tpu.iota {dimensions = array<i32: 0>} : vector<8x4xi32>
    %c7_i32 = arith.constant 7 : i32
    %9 = vector.broadcast %c7_i32 : i32 to vector<8x4xi32>
    %10 = arith.cmpi slt, %8, %9 : vector<8x4xi32>
    %11 = vector.extract_strided_slice %5 {offsets = [7, 0], sizes = [1, 128], strides = [1, 1]} : vector<8x384xf32> to vector<1x128xf32>
    %cst_9 = arith.constant 0.176776692 : f32
    %12 = vector.broadcast %cst_9 : f32 to vector<1x128xf32>
    %13 = arith.mulf %11, %12 : vector<1x128xf32>
    %14 = vector.extract_strided_slice %5 {offsets = [0, 128], sizes = [8, 128], strides = [1, 1]} : vector<8x384xf32> to vector<8x128xf32>
    %15 = vector.extract_strided_slice %5 {offsets = [0, 256], sizes = [8, 128], strides = [1, 1]} : vector<8x384xf32> to vector<8x128xf32>
    %16 = vector.broadcast %13 : vector<1x128xf32> to vector<8x128xf32>
    %17 = arith.mulf %16, %14 : vector<8x128xf32>
    %cst_10 = arith.constant dense<0.000000e+00> : vector<8x4xf32>
    %18 = tpu.matmul %17, %6, %cst_10 {dimension_numbers = #tpu.dot_dimension_numbers<[1], [0], [0], [1], [0, 0, 1, 1], [], []>} : vector<8x128xf32>, vector<128x4xf32>, vector<8x4xf32> -> vector<8x4xf32>
    %cst_11 = arith.constant -1.000000e+30 : f32
    %19 = vector.broadcast %cst_11 : f32 to vector<8x4xf32>
    %20 = arith.select %10, %18, %19 : vector<8x4xi1>, vector<8x4xf32>
    %cst_12 = arith.constant dense<0xFF800000> : vector<4xf32>
    %21 = vector.multi_reduction <maximumf>, %20, %cst_12 [0] : vector<8x4xf32> to vector<4xf32>
    %22 = vector.shape_cast %21 : vector<4xf32> to vector<1x4xf32>
    %23 = vector.broadcast %22 : vector<1x4xf32> to vector<8x4xf32>
    %24 = arith.subf %20, %23 : vector<8x4xf32>
    %25 = math.exp %24 : vector<8x4xf32>
    %cst_13 = arith.constant dense<0.000000e+00> : vector<4xf32>
    %26 = vector.multi_reduction <add>, %25, %cst_13 [0] : vector<8x4xf32> to vector<4xf32>
    %27 = vector.shape_cast %26 : vector<4xf32> to vector<1x4xf32>
    %28 = tpu.reciprocal %27 {approx = true} : vector<1x4xf32> -> vector<1x4xf32>
    %29 = vector.broadcast %28 : vector<1x4xf32> to vector<8x4xf32>
    %30 = arith.mulf %25, %29 : vector<8x4xf32>
    %cst_14 = arith.constant dense<0.000000e+00> : vector<8x128xf32>
    %31 = tpu.matmul %30, %7, %cst_14 {dimension_numbers = #tpu.dot_dimension_numbers<[1], [0], [0], [1], [0, 0, 1, 1], [], []>} : vector<8x4xf32>, vector<4x128xf32>, vector<8x128xf32> -> vector<8x128xf32>
    %32 = arith.mulf %31, %15 : vector<8x128xf32>
    %cst_15 = arith.constant dense<0.000000e+00> : vector<128xf32>
    %33 = vector.multi_reduction <add>, %32, %cst_15 [0] : vector<8x128xf32> to vector<128xf32>
    %34 = vector.shape_cast %33 : vector<128xf32> to vector<1x128xf32>
    %cst_16 = arith.constant dense<0.000000e+00> : vector<8xf32>
    %35 = vector.multi_reduction <add>, %30, %cst_16 [1] : vector<8x4xf32> to vector<8xf32>
    %36 = vector.shape_cast %35 : vector<8xf32> to vector<8x1xf32>
    %cst_17 = arith.constant 4.000000e+00 : f32
    %37 = vector.broadcast %cst_17 : f32 to vector<8x1xf32>
    %38 = arith.divf %36, %37 : vector<8x1xf32>
    %39 = vector.shape_cast %38 : vector<8x1xf32> to vector<8x1xf32>
    %40 = vector.broadcast %39 : vector<8x1xf32> to vector<8x128xf32>
    %c0_18 = arith.constant 0 : index
    %c0_19 = arith.constant 0 : index
    %41 = vector.load %arg11[%c0_18, %c0_19] : memref<8x128xf32, #tpu.memory_space<vmem>>, vector<8x128xf32>
    tpu.vector_store %arg11[%c0_18, %c0_19], %40 {strides = array<i32>} : memref<8x128xf32, #tpu.memory_space<vmem>>, vector<8x128xf32>,
    %c0_20 = arith.constant 0 : index
    %c0_21 = arith.constant 0 : index
    %42 = vector.load %arg4[%c0_20, %c0_21] : memref<128x128xf32, #tpu.memory_space<vmem>>, vector<128x128xf32>
    %cst_22 = arith.constant dense<0.000000e+00> : vector<1x128xf32>
    %43 = tpu.matmul %34, %42, %cst_22 {dimension_numbers = #tpu.dot_dimension_numbers<[1], [0], [0], [1], [0, 0, 1, 1], [], []>} : vector<1x128xf32>, vector<128x128xf32>, vector<1x128xf32> -> vector<1x128xf32>
    %c0_23 = arith.constant 0 : index
    %c0_24 = arith.constant 0 : index
    %44 = vector.load %arg5[%c0_23, %c0_24] : memref<1x128xf32, #tpu.memory_space<vmem>>, vector<1x128xf32>
    %45 = arith.addf %43, %44 : vector<1x128xf32>
    %c0_25 = arith.constant 0 : index
    %c0_26 = arith.constant 0 : index
    %46 = vector.load %arg6[%c0_25, %c0_26] : memref<1x128xf32, #tpu.memory_space<vmem>>, vector<1x128xf32>
    %c0_27 = arith.constant 0 : index
    %c0_28 = arith.constant 0 : index
    %47 = vector.load %arg7[%c0_27, %c0_28] : memref<1x128xf32, #tpu.memory_space<vmem>>, vector<1x128xf32>
    %48 = vector.broadcast %45 : vector<1x128xf32> to vector<8x128xf32>
    %49 = arith.addf %0, %48 : vector<8x128xf32>
    %cst_29 = arith.constant dense<0.000000e+00> : vector<8xf32>
    %50 = vector.multi_reduction <add>, %49, %cst_29 [1] : vector<8x128xf32> to vector<8xf32>
    %51 = vector.shape_cast %50 : vector<8xf32> to vector<8x1xf32>
    %cst_30 = arith.constant 1.280000e+02 : f32
    %52 = vector.broadcast %cst_30 : f32 to vector<8x1xf32>
    %53 = arith.divf %51, %52 : vector<8x1xf32>
    %54 = vector.broadcast %53 : vector<8x1xf32> to vector<8x128xf32>
    %55 = arith.subf %49, %54 : vector<8x128xf32>
    %56 = arith.mulf %55, %55 : vector<8x128xf32>
    %cst_31 = arith.constant dense<0.000000e+00> : vector<8xf32>
    %57 = vector.multi_reduction <add>, %56, %cst_31 [1] : vector<8x128xf32> to vector<8xf32>
    %58 = vector.shape_cast %57 : vector<8xf32> to vector<8x1xf32>
    %cst_32 = arith.constant 1.280000e+02 : f32
    %59 = vector.broadcast %cst_32 : f32 to vector<8x1xf32>
    %60 = arith.divf %58, %59 : vector<8x1xf32>
    %cst_33 = arith.constant 9.99999974E-6 : f32
    %61 = vector.broadcast %cst_33 : f32 to vector<8x1xf32>
    %62 = arith.addf %60, %61 : vector<8x1xf32>
    %63 = math.rsqrt %62 : vector<8x1xf32>
    %64 = vector.broadcast %63 : vector<8x1xf32> to vector<8x128xf32>
    %65 = arith.mulf %55, %64 : vector<8x128xf32>
    %66 = vector.broadcast %46 : vector<1x128xf32> to vector<8x128xf32>
    %67 = arith.mulf %65, %66 : vector<8x128xf32>
    %68 = vector.broadcast %47 : vector<1x128xf32> to vector<8x128xf32>
    %69 = arith.addf %67, %68 : vector<8x128xf32>
    %c0_34 = arith.constant 0 : index
    %c0_35 = arith.constant 0 : index
    %70 = vector.load %arg10[%c0_34, %c0_35] : memref<8x128xf32, #tpu.memory_space<vmem>>, vector<8x128xf32>
    tpu.vector_store %arg10[%c0_34, %c0_35], %69 {strides = array<i32>} : memref<8x128xf32, #tpu.memory_space<vmem>>, vector<8x128xf32>,
    return
  }
  func.func @transform_0(%arg0: i32) -> (i32, i32) {
    %c0_i32 = arith.constant 0 : i32
    %c0_i32_0 = arith.constant 0 : i32
    return %arg0, %c0_i32 : i32, i32
  }
  func.func @transform_1(%arg0: i32) -> (i32, i32) {
    %c0_i32 = arith.constant 0 : i32
    %c0_i32_0 = arith.constant 0 : i32
    %c0_i32_1 = arith.constant 0 : i32
    return %c0_i32, %c0_i32_0 : i32, i32
  }
  func.func @transform_2(%arg0: i32) -> (i32, i32) {
    %c0_i32 = arith.constant 0 : i32
    %c0_i32_0 = arith.constant 0 : i32
    %c0_i32_1 = arith.constant 0 : i32
    return %c0_i32, %c0_i32_0 : i32, i32
  }
  func.func @transform_3(%arg0: i32) -> (i32, i32) {
    %c0_i32 = arith.constant 0 : i32
    %c0_i32_0 = arith.constant 0 : i32
    %c0_i32_1 = arith.constant 0 : i32
    return %c0_i32, %c0_i32_0 : i32, i32
  }
  func.func @transform_4(%arg0: i32) -> (i32, i32) {
    %c0_i32 = arith.constant 0 : i32
    %c0_i32_0 = arith.constant 0 : i32
    %c0_i32_1 = arith.constant 0 : i32
    return %c0_i32, %c0_i32_0 : i32, i32
  }
  func.func @transform_5(%arg0: i32) -> (i32, i32) {
    %c0_i32 = arith.constant 0 : i32
    %c0_i32_0 = arith.constant 0 : i32
    %c0_i32_1 = arith.constant 0 : i32
    return %c0_i32, %c0_i32_0 : i32, i32
  }
  func.func @transform_6(%arg0: i32) -> (i32, i32) {
    %c0_i32 = arith.constant 0 : i32
    %c0_i32_0 = arith.constant 0 : i32
    %c0_i32_1 = arith.constant 0 : i32
    return %c0_i32, %c0_i32_0 : i32, i32
  }
  func.func @transform_7(%arg0: i32) -> (i32, i32) {
    %c0_i32 = arith.constant 0 : i32
    %c0_i32_0 = arith.constant 0 : i32
    %c0_i32_1 = arith.constant 0 : i32
    return %c0_i32, %c0_i32_0 : i32, i32
  }
  func.func @transform_8(%arg0: i32) -> (i32, i32) {
    %c0_i32 = arith.constant 0 : i32
    %c0_i32_0 = arith.constant 0 : i32
    %c0_i32_1 = arith.constant 0 : i32
    return %c0_i32, %c0_i32_0 : i32, i32
  }
  func.func @transform_9(%arg0: i32) -> (i32, i32) {
    %c0_i32 = arith.constant 0 : i32
    %c0_i32_0 = arith.constant 0 : i32
    return %arg0, %c0_i32 : i32, i32
  }
  func.func @transform_10(%arg0: i32) -> (i32, i32) {
    %c0_i32 = arith.constant 0 : i32
    %c0_i32_0 = arith.constant 0 : i32
    return %arg0, %c0_i32 : i32, i32
  }
}

</mosaic_0001>

<bundles_post_ra>
// kernel: tpu_custom_call.1
= control target key start
LH: loop header
LB: loop body
LE: loop exit
PB: predicated region body
PF: predicated region fallthrough
CT: control target
= control target key end

     0   :  { %16 = vsyncpa [#allocation3], 0  ;;  %s2071_s0 = inlined_call_operand.hbm [shape: f32[16,128], index: 0, kind: input, shape index: {}]   ;;  %s2072_s1 = inlined_call_operand.hbm [shape: f32[128,384], index: 1, kind: input, shape index: {}]   ;;  %s2073_s2 = inlined_call_operand.vmem [shape: f32[1,384], index: 2, kind: input, shape index: {}]   ;;  %s2074_s3 = inlined_call_operand.vmem [shape: f32[128,128], index: 3, kind: input, shape index: {}]   ;;  %s2075_s4 = inlined_call_operand.vmem [shape: f32[1,128], index: 4, kind: input, shape index: {}]   ;;  %s2076_s5 = inlined_call_operand.vmem [shape: f32[1,128], index: 5, kind: input, shape index: {}]   ;;  %s2077_s6 = inlined_call_operand.vmem [shape: f32[1,128], index: 6, kind: input, shape index: {}]   ;;  %s2078_s7 = inlined_call_operand.vmem [shape: f32[128,4], index: 7, kind: input, shape index: {}]   ;;  %s2079_s8 = inlined_call_operand.vmem [shape: f32[4,128], index: 8, kind: input, shape index: {}]   ;;  %s2080_s9 = inlined_call_operand.hbm [shape: f32[16,128], index: 9, kind: output, shape index: {0}]   ;;  %s2081_s10 = inlined_call_operand.hbm [shape: f32[16,128], index: 10, kind: output, shape index: {1}]  }
   0x1   :  { %18 = vsyncpa [#allocation3 + $0x1], 0 }
   0x2   :  { %19 = vsyncpa [#allocation6], 0 }
   0x3   :  { %20 = vsyncpa [#allocation4], 0 }
   0x4   :  { %22 = vsyncpa [#allocation4 + $0x1], 0 }
   0x5   :  { %23 = vsyncpa [#allocation9], 0 }
   0x6   :  { %25 = vsyncpa [#allocation9 + $0x1], 0  ;;  %s1667_s13 = smov 0   ;;  %s1669_s14 = smov 0  }
   0x7   :  { %s1671_s15 = smov 0   ;;  %s1673_s16 = smov 0  }
   0x8 LB: > { %2089 = sst [smem:[#allocation14_spill]] %s1589_s13  ;;  %s1688_s17 = sadd.s32 4294967295, %s1601_s16   ;;  %s1601_s16 = sphi %s1673_s16, %s2107_s16   ;;  %s1597_s15 = sphi %s1671_s15, %s2110_s15   ;;  %s1593_s14 = sphi %s1669_s14, %s2109_s14   ;;  %s1589_s13 = sphi %s1667_s13, %s2108_s13  }
   0x9   : > { %s1080_s18 = sadd.s32 4294967294, %s1601_s16   ;;  %p51_p0 = scmp.ne.s32.totalorder %s1593_s14, %s1589_s13 }
   0xa   : > { %p2084_p1 = scmp.eq.s32.totalorder %s1688_s17, 0  ;;  %p249_p3 = scmp.eq.s32.totalorder %s1080_s18, 1 }
   0xb   : > { %p1081_p5 = scmp.ge.s32.totalorder %s1601_s16, 1  ;;  %p282_p7 = scmp.lt.s32.totalorder %s1601_s16, 3 }
   0xc   : > { %p1697_p4 = por %p2084_p1, %p51_p0  ;;  %p1702_p6 = por %p249_p3, %p51_p0 }
   0xd   : > { %p1707_p8 = pnand %p1081_p5, %p282_p7  ;;  %s1603_s22 = smov [#allocation5]  }
   0xe   : > { %s2090_s19 = scalar_select %p1697_p4, 1, 0 }
   0xf   : > { %s2091_s20 = scalar_select %p1702_p6, 1, 0 }
  0x10   : > { %s2093_s21 = scalar_select %p1707_p8, 1, 0 }
  0x11   : > { %2092 = sst [smem:[#allocation15_spill]] %s2091_s20  ;;  %s294_s23 = sshll.u32 %s1603_s22, 4  ;;  %s1711_s23 = int_to_ptr.vmem [resolvable:$true] %s294_s23 }
  0x12   : > { %p1378_p9 = pneg %p1707_p8  ;;  %s1723_s25 = sadd.s32 1, %s1601_s16  }
  0x13   : > { %2095 = sst [smem:[#allocation16_spill]] %s1723_s25  ;;  %s38_s26 = sadd.s32 1, %s1597_s15 }
  0x14   : > { %p1718_p11 = pnand %p1378_p9, %p2084_p1  ;;  %s35_s27 = ssub.s32 %s1601_s16, %s1723_s25 }
  0x15   : > { %s1441_s30 = scalar_lea.hbm %s2072_s1, 6144 }
  0x16   : > { %p1442_p12 = scmp.ne.s32.totalorder %s2072_s1, %s1441_s30  ;;  %p1443_p13 = pneg %p1718_p11 }
  0x17   : > { %p1448_p5 = scmp.lt.u32.totalorder %s1441_s30, %s2072_s1 }
  0x18   : > { %p1444_p0 = pnand %p1443_p13, %p1442_p12 }
  0x1a   : > { %p1445_p3 = pneg %p1444_p0 }
  0x1c   : > { %p1450_p7 = pnand %p1448_p5, %p1445_p3 }
  0x1e   : > { %1453 = shalt.err (!%p1450_p7)
}
  0x1f   : > { %s1454_s25 = scalar_lea.vmem %s1711_s23, 6144  ;;  %p1462_p2 = scmp.lt.s32.totalorder %s1711_s23, %s1711_s23 }
  0x20   : > { %p1455_p9 = scmp.ne.s32.totalorder %s1711_s23, %s1454_s25  ;;  %p1463_p6 = scmp.lt.s32.totalorder %s1454_s25, %s1454_s25 }
  0x22   : > { %p1457_p10 = pnand %p1455_p9, %p1443_p13  ;;  %p1464_p4 = por %p1463_p6, %p1462_p2 }
  0x24   : > { %p1458_p1 = pneg %p1457_p10 }
  0x26   : > { %p1465_p8 = pnand %p1464_p4, %p1458_p1 }
  0x28   : > { %1468 = shalt.err (!%p1465_p8)
}
  0x29   : > { %s1604_s28 = smov 384   ;;  %s1605_s29 = smov 24  }
  0x2a   : > { %1381 = dma.hbm_to_vmem [thread:$0]  (!%p1718_p11), %s2072_s1, 6144, %s1711_s23, [#allocation6], %s1604_s28, %s1604_s28, %s1605_s29  }
  0x2b   : > { %p36_p2 = scmp.eq.s32.totalorder %s35_s27, 0  ;;  %p45_p1 = scmp.ne.s32.totalorder %s1597_s15, %s1593_s14 }
  0x2c   : > { %p46_p4 = scmp.eq.s32.totalorder %s1601_s16, 0  ;;  %p1394_p6 = scmp.lt.s32.totalorder %s1601_s16, 2 }
  0x2d   : > { %s1754_s25 = scalar_select %p36_p2, %s1597_s15, %s38_s26  }
  0x2e   : > { %p47_p8 = por %p46_p4, %p45_p1  ;;  %p2096_p10 = scmp.eq.s32.totalorder %s1688_s17, 1 }
  0x2f   : > { %s329_s18 = sand.u32 1, %s1597_s15   ;;  %s1085_s22 = sshll.u32 %s1601_s16, 7 }
  0x30   : > { %p1758_p12 = por %p2096_p10, %p45_p1  ;;  %s1084_s20 = sshll.u32 %s329_s18, 3 }
  0x31   : > { %s1767_s30 = scalar_lea.hbm %s2071_s0, %s1085_s22  ;;  %s333_s23 = scalar_lea.vmem [#allocation2], %s1084_s20 }
  0x32   : > { %s340_s26 = sshll.u32 %s333_s23, 4  ;;  %p1769_p11 = pnand %p1394_p6, %p47_p8  ;;  %s1773_s26 = int_to_ptr.vmem [resolvable:$true] %s340_s26 }
  0x33   : > { %s330_s28 = scalar_lea.sflag [#allocation3], %s329_s18  ;;  %s1469_s29 = scalar_lea.hbm %s1767_s30, 128 }
  0x34   : > { %p1470_p13 = scmp.ne.s32.totalorder %s1767_s30, %s1469_s29  ;;  %p1471_p0 = pneg %p1769_p11 }
  0x35   : > { %s1474_s11 = scalar_lea.hbm %s2071_s0, 256  ;;  %p1475_p7 = scmp.lt.u32.totalorder %s1767_s30, %s2071_s0 }
  0x36   : > { %p1472_p3 = pnand %p1471_p0, %p1470_p13  ;;  %p1476_p9 = scmp.lt.u32.totalorder %s1474_s11, %s1469_s29 }
  0x37   : > { %p1478_p1 = scmp.lt.u32.totalorder %s1469_s29, %s1767_s30 }
  0x38   : > { %p1473_p5 = pneg %p1472_p3  ;;  %p1477_p2 = por %p1476_p9, %p1475_p7 }
  0x3a   : > { %p1479_p4 = por %p1478_p1, %p1477_p2 }
  0x3c   : > { %p1480_p6 = pnand %p1479_p4, %p1473_p5 }
  0x3e   : > { %1483 = shalt.err (!%p1480_p6)
}
  0x3f   : > { %s1484_s18 = scalar_lea.vmem %s1773_s26, 128  ;;  %s1606_s23 = smov [#allocation2]  }
  0x40   : > { %p1485_p8 = scmp.ne.s32.totalorder %s1773_s26, %s1484_s18  ;;  %s1489_s13 = sshll.u32 %s1606_s23, 4  ;;  %s1490_s13 = int_to_ptr.vmem [resolvable:$false] %s1489_s13 }
  0x41   : > { %s1491_s20 = scalar_lea.vmem %s1490_s13, 256  ;;  %p1492_p3 = scmp.lt.s32.totalorder %s1773_s26, %s1490_s13 }
  0x42   : > { %p1487_p10 = pnand %p1485_p8, %p1471_p0  ;;  %p1493_p7 = scmp.lt.s32.totalorder %s1491_s20, %s1484_s18 }
  0x44   : > { %p1488_p13 = pneg %p1487_p10  ;;  %p1494_p9 = por %p1493_p7, %p1492_p3 }
  0x46   : > { %p1495_p2 = pnand %p1494_p9, %p1488_p13 }
  0x48   : > { %1498 = shalt.err (!%p1495_p2)
}
  0x49   : > { %1385 = dma.hbm_to_vmem [thread:$0]  (!%p1769_p11), %s1767_s30, 128, %s1773_s26, %s330_s28  }
  0x4a   : > { %p2099_p5 = scmp.ne.s32.totalorder %s2093_s21, 0 }
  0x4b   : > { %s1803_s29 = sand.u32 (!%p2099_p5), 1, %s1593_s14   ;;  %p2100_p0 = scmp.ne.s32.totalorder (!%p2099_p5), %s2090_s19, 0 }
  0x4c   : > { %349 = sbr.rel (%p2099_p5) target bundleno = 1378 (0x562), region = 56  ;;  %s1806_s11 = sshll.u32 (!%p2099_p5), %s1803_s29, 3 }
  0x4d   : > { %s352_s22 = scalar_lea.sflag (!%p2099_p5), [#allocation3], %s1803_s29  ;;  %s355_s24 = scalar_lea.vmem (!%p2099_p5), [#allocation2], %s1806_s11 }
  0x53   : > { %1572 = dma.done.wait (%p2100_p0), %s352_s22, 128  }
  0x54   : > { %1574 = vsyncadd (%p2100_p0), %s352_s22, 4294967168  ;;  %p2101_p11 = scmp.eq.s32.totalorder %s1688_s17, 0 }
  0x56   : > { %1576 = dma.done.wait (%p2101_p11), [#allocation6], 6144   ;;  %p2102_p1 = pmov %p2101_p11 }
  0x57   : > { %v1607_v0 = vmov 0.0   ;;  %v1608_v1 = vmov 0.0|0.0   ;;  %v403_v2 = vld [vmem:[#allocation5 + $0x8] sm:$0xff]  ;;  %v406_v3 = vld [vmem:[#allocation5 + $0x20] sm:$0xff]  ;;  %v405_v6 = vld [vmem:[#allocation5 + $0x18] sm:$0xff]  ;;  %vm1609_vm0 = vmmov 0  }
  0x58   : > { %1578 = vsyncadd (%p2102_p1), [#allocation6], 4294961152  ;;  %531 = vmatprep.mubr.f32.mxu0 %v1607_v0  ;;  %1296 = vmatprep.subr.bf16.mxu1 %v1608_v1  ;;  %v402_v4 = vld [vmem:[#allocation5] sm:$0xff]  ;;  %v1264_v5 = vpack.c.bf16 %v406_v3, %v403_v2  ;;  %v409_v7 = vld [vmem:[#allocation5 + $0x38] sm:$0xff]  ;;  %vm728_vm1 = vcmask 1043456   ;;  %vm705_vm3 = vcmask 31744  }
  0x59   : > { %v412_v8 = vld [vmem:[#allocation5 + $0x50] sm:$0xff]  ;;  %v1266_v9 = vpack.c.bf16 %v405_v6, %v402_v4  ;;  %v411_v12 = vld [vmem:[#allocation5 + $0x48] sm:$0xff]  ;;  %v418_v14 = vld [vmem:[#allocation5 + $0x80] sm:$0xff]  ;;  %1186 = vmatprep.mubr.msk.f32.mxu1 %vm1609_vm0, %v1607_v0  ;;  %s400_s13 = scalar_lea.vmem [#allocation8], %s1806_s11  ;;  %s942_s27 = scalar_lea.sflag [#allocation9], %s1803_s29 }
  0x5a   : > { %v1268_v10 = vpack.c.bf16 %v412_v8, %v409_v7  ;;  %v408_v11 = vld [vmem:[#allocation5 + $0x30] sm:$0xff]  ;;  %v415_v13 = vld [vmem:[#allocation5 + $0x68] sm:$0xff]  ;;  %1265 = vmatprep.subr.bf16.mxu0 %v1264_v5  ;;  %v414_v17 = vld [vmem:[#allocation5 + $0x60] sm:$0xff]  ;;  %s968_s26 = sshll.u32 %s400_s13, 4  ;;  %s1610_s18 = smov [#allocation8]   ;;  %s969_s26 = int_to_ptr.vmem [resolvable:$true] %s968_s26 }
  0x5b   : > { %1267 = vmatpush1.bf16.msra.mxu0 %v1266_v9  ;;  %v1270_v15 = vpack.c.bf16 %v411_v12, %v408_v11  ;;  %v1272_v16 = vpack.c.bf16 %v418_v14, %v415_v13  ;;  %v417_v18 = vld [vmem:[#allocation5 + $0x78] sm:$0xff]  ;;  %v424_v20 = vld [vmem:[#allocation5 + $0xb0] sm:$0xff]  ;;  %v423_v24 = vld [vmem:[#allocation5 + $0xa8] sm:$0xff]  ;;  %v452_v13 = vlaneseq  ;;  %s1499_s28 = scalar_lea.vmem %s969_s26, 128  ;;  %s1503_s23 = sshll.u32 %s1610_s18, 4  ;;  %s1504_s23 = int_to_ptr.vmem [resolvable:$false] %s1503_s23 }
  0x5c   : > { %1269 = vmatprep.subr.bf16.mxu0 %v1268_v10  ;;  %v421_v19 = vld [vmem:[#allocation5 + $0x98] sm:$0xff]  ;;  %v1274_v21 = vpack.c.bf16 %v417_v18, %v414_v17  ;;  %v420_v23 = vld [vmem:[#allocation5 + $0x90] sm:$0xff]  ;;  %v427_v25 = vld [vmem:[#allocation5 + $0xc8] sm:$0xff]  ;;  %p1500_p4 = scmp.ne.s32.totalorder %s969_s26, %s1499_s28  ;;  %s1505_s20 = scalar_lea.vmem %s1504_s23, 256 }
  0x5d   : > { %v1276_v22 = vpack.c.bf16 %v424_v20, %v421_v19  ;;  %v430_v26 = vld [vmem:[#allocation5 + $0xe0] sm:$0xff]  ;;  %v1278_v27 = vpack.c.bf16 %v423_v24, %v420_v23  ;;  %v429_v30 = vld [vmem:[#allocation5 + $0xd8] sm:$0xff]  ;;  %v436_v32 = vld [vmem:[#allocation5 + $0x110] sm:$0xff]  ;;  %v1885_v14 = vshrl.u32 %v452_v13, 7  ;;  %p1506_p10 = scmp.lt.s32.totalorder %s969_s26, %s1504_s23  ;;  %p1507_p13 = scmp.lt.s32.totalorder %s1505_s20, %s1499_s28 }
  0x5e   : > { %v1280_v28 = vpack.c.bf16 %v430_v26, %v427_v25  ;;  %v426_v29 = vld [vmem:[#allocation5 + $0xc0] sm:$0xff]  ;;  %v433_v31 = vld [vmem:[#allocation5 + $0xf8] sm:$0xff]  ;;  %v432_v35 = vld [vmem:[#allocation5 + $0xf0] sm:$0xff]  ;;  %p1501_p6 = pnand %p1500_p4, %p1758_p12 }
  0x5f   : > { %1271 = vmatpush1.bf16.msra.mxu0 %v1270_v15  ;;  %v1282_v33 = vpack.c.bf16 %v429_v30, %v426_v29  ;;  %v1284_v34 = vpack.c.bf16 %v436_v32, %v433_v31  ;;  %v435_v36 = vld [vmem:[#allocation5 + $0x108] sm:$0xff]  ;;  %v442_v38 = vld [vmem:[#allocation5 + $0x140] sm:$0xff]  ;;  %v441_v42 = vld [vmem:[#allocation5 + $0x138] sm:$0xff]  ;;  %v454_v15 = vsub.s32 0, %v1885_v14  ;;  %v458_v18 = vsub.s32 1, %v1885_v14  ;;  %p1508_p3 = por %p1507_p13, %p1506_p10 }
  0x60   : > { %1273 = vmatprep.subr.bf16.mxu0 %v1272_v16  ;;  %v439_v37 = vld [vmem:[#allocation5 + $0x128] sm:$0xff]  ;;  %v1286_v39 = vpack.c.bf16 %v435_v36, %v432_v35  ;;  %v438_v41 = vld [vmem:[#allocation5 + $0x120] sm:$0xff]  ;;  %v445_v43 = vld [vmem:[#allocation5 + $0x158] sm:$0xff]  ;;  %vm627_vm2 = vcmp.lt.s32.totalorder %v1885_v14, 7  ;;  %p1502_p8 = pneg %p1501_p6 }
  0x61   : > { %v1288_v40 = vpack.c.bf16 %v442_v38, %v439_v37  ;;  %v448_v44 = vld [vmem:[#allocation5 + $0x170] sm:$0xff]  ;;  %v1290_v45 = vpack.c.bf16 %v441_v42, %v438_v41  ;;  %v447_v48 = vld [vmem:[#allocation5 + $0x168] sm:$0xff]  ;;  %v609_v51 = vld [vmem:[%s2078_s7 + $0x8] sm:$0xff] }
  0x62   : > { %v1292_v46 = vpack.c.bf16 %v448_v44, %v445_v43  ;;  %v444_v47 = vld [vmem:[#allocation5 + $0x150] sm:$0xff]  ;;  %v610_v54 = vld [vmem:[%s2078_s7 + $0x10] sm:$0xff]  ;;  %v611_v55 = vld [vmem:[%s2078_s7 + $0x18] sm:$0xff]  ;;  %p1509_p7 = pnand %p1508_p3, %p1502_p8 }
  0x63   : > { %1275 = vmatpush1.bf16.msra.mxu0 %v1274_v21  ;;  %v1294_v49 = vpack.c.bf16 %v447_v48, %v444_v47  ;;  %v608_v50 = vld [vmem:[%s2078_s7] sm:$0xff]  ;;  %v1324_v56 = vpack.c.bf16 %v611_v55, %v610_v54  ;;  %v613_v58 = vld [vmem:[%s2078_s7 + $0x28] sm:$0xff]  ;;  %v614_v60 = vld [vmem:[%s2078_s7 + $0x30] sm:$0xff]  ;;  %v631_v21 = vsub.s32 7, %v1885_v14 }
  0x64   : > { %1277 = vmatprep.subr.bf16.mxu0 %v1276_v22  ;;  %v1828_v52 = vld [vmem:[%s355_s24] sm:$0xff]  ;;  %v1321_v53 = vpack.c.bf16 %v609_v51, %v608_v50  ;;  %v615_v61 = vld [vmem:[%s2078_s7 + $0x38] sm:$0xff]  ;;  %v618_v4 = vld [vmem:[%s2078_s7 + $0x50] sm:$0xff]  ;;  %s1097_s24 = sshll.u32 %s1688_s17, 7 }
  0x65   : > { %v612_v57 = vld [vmem:[%s2078_s7 + $0x20] sm:$0xff]  ;;  %v1330_v62 = vpack.c.bf16 %v615_v61, %v614_v60  ;;  %v617_v2 = vld [vmem:[%s2078_s7 + $0x48] sm:$0xff]  ;;  %v619_v5 = vld [vmem:[%s2078_s7 + $0x58] sm:$0xff]  ;;  %s1993_s30 = scalar_lea.hbm %s2081_s10, %s1097_s24 }
  0x66   : > { %v1327_v59 = vpack.c.bf16 %v613_v58, %v612_v57  ;;  %v616_v63 = vld [vmem:[%s2078_s7 + $0x40] sm:$0xff]  ;;  %v1336_v6 = vpack.c.bf16 %v619_v5, %v618_v4  ;;  %v621_v8 = vld [vmem:[%s2078_s7 + $0x68] sm:$0xff]  ;;  %v622_v10 = vld [vmem:[%s2078_s7 + $0x70] sm:$0xff] }
  0x67   : > { %1279 = vmatpush1.bf16.msra.mxu0 %v1278_v27  ;;  %v1333_v3 = vpack.c.bf16 %v617_v2, %v616_v63  ;;  %v620_v7 = vld [vmem:[%s2078_s7 + $0x60] sm:$0xff]  ;;  %v623_v11 = vld [vmem:[%s2078_s7 + $0x78] sm:$0xff]  ;;  %v410_v31 = vld [vmem:[#allocation5 + $0x40] sm:$0xff] }
  0x68   : > { %1281 = vmatprep.subr.bf16.mxu0 %v1280_v28  ;;  %v1339_v9 = vpack.c.bf16 %v621_v8, %v620_v7  ;;  %v1342_v12 = vpack.c.bf16 %v623_v11, %v622_v10  ;;  %v1891_v16 = vld [vmem:[%s2073_s2] sm:$0x7]  ;;  %v407_v29 = vld [vmem:[#allocation5 + $0x28] sm:$0xff]  ;;  %v413_v32 = vld [vmem:[#allocation5 + $0x58] sm:$0xff] }
  0x69   : > { %v455_v17 = vrot.slane %v1891_v16, %v454_v15  ;;  %v459_v22 = vrot.slane %v1891_v16, %v458_v18  ;;  %v404_v28 = vld [vmem:[#allocation5 + $0x10] sm:$0xff]  ;;  %v419_v35 = vld [vmem:[#allocation5 + $0x88] sm:$0xff]  ;;  %v422_v37 = vld [vmem:[#allocation5 + $0xa0] sm:$0xff] }
  0x6a   : > { %v1297_v30 = vpack.c.bf16 %v407_v29, %v404_v28  ;;  %v425_v38 = vld [vmem:[#allocation5 + $0xb8] sm:$0xff]  ;;  %v431_v41 = vld [vmem:[#allocation5 + $0xe8] sm:$0xff]  ;;  %v434_v43 = vld [vmem:[#allocation5 + $0x100] sm:$0xff] }
  0x6b   : > { %1283 = vmatpush1.bf16.msra.mxu0 %v1282_v33  ;;  %v1300_v33 = vpack.c.bf16 %v413_v32, %v410_v31  ;;  %v437_v44 = vld [vmem:[#allocation5 + $0x118] sm:$0xff]  ;;  %v443_v47 = vld [vmem:[#allocation5 + $0x148] sm:$0xff]  ;;  %v815_v18 = vld [vmem:[%s2074_s3] sm:$0xff] }
  0x6c   : > { %1285 = vmatprep.subr.bf16.mxu0 %v1284_v34  ;;  %1298 = vmatpush3.bf16.msra.mxu1 %v1297_v30  ;;  %v416_v34 = vld [vmem:[#allocation5 + $0x70] sm:$0xff]  ;;  %v449_v50 = vld [vmem:[#allocation5 + $0x178] sm:$0xff] }
  0x6d   : > { %1299 = vmatprep.subr.bf16.mxu1 %v1608_v1  ;;  %v1303_v36 = vpack.c.bf16 %v419_v35, %v416_v34  ;;  %v823_v31 = vld [vmem:[%s2074_s3 + $0x40] sm:$0xff]  ;;  %v824_v32 = vld [vmem:[%s2074_s3 + $0x48] sm:$0xff]  ;;  %v825_v34 = vld [vmem:[%s2074_s3 + $0x50] sm:$0xff] }
  0x6e   : > { %v826_v35 = vld [vmem:[%s2074_s3 + $0x58] sm:$0xff] }
  0x6f   : > { %1287 = vmatpush1.bf16.msra.mxu0 %v1286_v39  ;;  %v1306_v39 = vpack.c.bf16 %v425_v38, %v422_v37  ;;  %v827_v37 = vld [vmem:[%s2074_s3 + $0x60] sm:$0xff]  ;;  %v828_v38 = vld [vmem:[%s2074_s3 + $0x68] sm:$0xff] }
  0x70   : > { %1289 = vmatprep.subr.bf16.mxu0 %v1288_v40  ;;  %1301 = vmatpush3.bf16.msra.mxu1 %v1300_v33  ;;  %v428_v40 = vld [vmem:[#allocation5 + $0xd0] sm:$0xff]  ;;  %v1357_v33 = vpack.c.bf16 %v824_v32, %v823_v31 }
  0x71   : > { %1302 = vmatprep.subr.bf16.mxu1 %v1608_v1  ;;  %v1309_v42 = vpack.c.bf16 %v431_v41, %v428_v40  ;;  %v829_v40 = vld [vmem:[%s2074_s3 + $0x70] sm:$0xff]  ;;  %v830_v41 = vld [vmem:[%s2074_s3 + $0x78] sm:$0xff] }
  0x73   : > { %1291 = vmatpush1.bf16.msra.mxu0 %v1290_v45  ;;  %v1312_v45 = vpack.c.bf16 %v437_v44, %v434_v43 }
  0x74   : > { %1293 = vmatprep.subr.bf16.mxu0 %v1292_v46  ;;  %1304 = vmatpush3.bf16.msra.mxu1 %v1303_v36  ;;  %v440_v46 = vld [vmem:[#allocation5 + $0x130] sm:$0xff]  ;;  %v1360_v36 = vpack.c.bf16 %v826_v35, %v825_v34 }
  0x75   : > { %1305 = vmatprep.subr.bf16.mxu1 %v1608_v1  ;;  %v1315_v48 = vpack.c.bf16 %v443_v47, %v440_v46 }
  0x77   : > { %1295 = vmatpush1.bf16.msra.mxu0 %v1294_v49  ;;  %v446_v49 = vld [vmem:[#allocation5 + $0x160] sm:$0xff] }
  0x78   : > { %1320 = vmatprep.subr.bf16.mxu0 %v1608_v1  ;;  %1307 = vmatpush3.bf16.msra.mxu1 %v1306_v39  ;;  %v1318_v51 = vpack.c.bf16 %v449_v50, %v446_v49  ;;  %v1363_v39 = vpack.c.bf16 %v828_v38, %v827_v37 }
  0x79   : > { %1308 = vmatprep.subr.bf16.mxu1 %v1608_v1 }
  0x7a   : > { %532 = vmatmul.mubr.f32.vlgmr.msra.gmra.mrb[0].mxu0 %v1828_v52 }
  0x7b   : > { %1322 = vmatpush3.bf16.msra.mxu0 %v1321_v53  ;;  %1221 = vmatprep.mubr.msk.f32.mxu0 %vm1609_vm0, %v1607_v0  ;;  %v624_v53 = vld [vmem:[%s2079_s8] sm:$0xf] }
  0x7c   : > { %1323 = vmatprep.subr.bf16.mxu0 %v1608_v1  ;;  %1310 = vmatpush3.bf16.msra.mxu1 %v1309_v42  ;;  %v1366_v42 = vpack.c.bf16 %v830_v41, %v829_v40 }
  0x7d   : > { %1311 = vmatprep.subr.bf16.mxu1 %v1608_v1 }
  0x7f   : > { %1325 = vmatpush3.bf16.msra.mxu0 %v1324_v56 }
  0x80   : > { %1326 = vmatprep.subr.bf16.mxu0 %v1608_v1  ;;  %1313 = vmatpush3.bf16.msra.mxu1 %v1312_v45  ;;  %v462_v45 = vsub.s32 2, %v1885_v14 }
  0x81   : > { %1314 = vmatprep.subr.bf16.mxu1 %v1608_v1 }
  0x82   : > { %v463_v46 = vrot.slane %v1891_v16, %v462_v45 }
  0x83   : > { %1328 = vmatpush3.bf16.msra.mxu0 %v1327_v59 }
  0x84   : > { %1329 = vmatprep.subr.bf16.mxu0 %v1608_v1  ;;  %1316 = vmatpush3.bf16.msra.mxu1 %v1315_v48 }
  0x85   : > { %1317 = vmatprep.subr.bf16.mxu1 %v1608_v1 }
  0x87   : > { %1331 = vmatpush3.bf16.msra.mxu0 %v1330_v62 }
  0x88   : > { %1332 = vmatprep.subr.bf16.mxu0 %v1608_v1  ;;  %1319 = vmatpush3.bf16.msra.mxu1 %v1318_v51 }
  0x89   : > { %1224 = vmatprep.subr.mxu1 %v1607_v0 }
  0x8b   : > { %1334 = vmatpush3.bf16.msra.mxu0 %v1333_v3  ;;  %1187 = vmatmul.mubr.f32.vlgmr.msra.gmra.mrb[0].mxu1 %v1828_v52 }
  0x8c   : > { %1335 = vmatprep.subr.bf16.mxu0 %v1608_v1  ;;  %1225 = vmatpush3.msk.msra.mxu1 %vm728_vm1, %v624_v53 }
  0x8d   : > { %1226 = vmatprep.mubr.msk.f32.mxu1 %vm1609_vm0, %v1607_v0  ;;  %1344 = vmatprep.subr.bf16.mxu1 %v1608_v1 }
  0x8f   : > { %1337 = vmatpush3.bf16.msra.mxu0 %v1336_v6 }
  0x90   : > { %1338 = vmatprep.subr.bf16.mxu0 %v1608_v1 }
  0x93   : > { %1340 = vmatpush3.bf16.msra.mxu0 %v1339_v9 }
  0x94   : > { %1341 = vmatprep.subr.bf16.mxu0 %v1608_v1 }
  0x97   : > { %1343 = vmatpush3.bf16.msra.mxu0 %v1342_v12 }
 0x14d   : > { %v533_v19 = vpop.f32.mrb[0].mxu0 }
 0x14e   : > { %v534_v20 = vadd.f32 %v533_v19, %v455_v17  ;;  %v535_v23 = vpop.f32.mrb[1].mxu0  ;;  %v816_v19 = vld [vmem:[%s2074_s3 + $0x8] sm:$0xff] }
 0x14f   : > { %v536_v26 = vadd.f32 %v535_v23, %v459_v22  ;;  %v818_v22 = vld [vmem:[%s2074_s3 + $0x18] sm:$0xff] }
 0x150   : > { %v628_v24 = vmul.f32 0.17677669, %v534_v20  ;;  %v817_v20 = vld [vmem:[%s2074_s3 + $0x10] sm:$0xff] }
 0x151   : > { %v1348_v23 = vpack.c.bf16 %v818_v22, %v817_v20 }
 0x152   : > { %v632_v25 = vrot.slane %v628_v24, %v631_v21  ;;  %v1345_v21 = vpack.c.bf16 %v816_v19, %v815_v18  ;;  %v820_v24 = vld [vmem:[%s2074_s3 + $0x28] sm:$0xff] }
 0x154   : > { %v633_v27 = vmul.f32 %v632_v25, %v536_v26  ;;  %v821_v26 = vld [vmem:[%s2074_s3 + $0x30] sm:$0xff] }
 0x156   : > { %1222 = vmatmul.mubr.f32.vlgmr.msra.gmra.mrb[2].mxu0 %v633_v27  ;;  %v822_v27 = vld [vmem:[%s2074_s3 + $0x38] sm:$0xff] }
 0x157   : > { %v1354_v28 = vpack.c.bf16 %v822_v27, %v821_v26 }
 0x15e   : > { %v604_v29 = vpop.f32.mrb[0].mxu1 }
 0x15f   : > { %v1188_v30 = vpop.f32.mrb[1].mxu1 }
 0x229   : > { %v700_v54 = vpop.f32.mrb[2].mxu0 }
 0x22a   : > { %v704_v55 = vsel %vm627_vm2, %v700_v54, -1e+30  ;;  %v1223_v56 = vpop.f32.mrb[3].mxu0 }
 0x22b   : > { %v706_v57 = vsel %vm705_vm3, %v704_v55, -inf }
 0x22c   : > { %v707_v58 = vrot.slane %v706_v57, 4 }
 0x22e   : > { %v708_v59 = vmax.f32 %v706_v57, %v707_v58  ;;  %v831_v57 = vld [vmem:[%s2075_s4] sm:$0x1] }
 0x230   : > { %v709_v60 = vrot.slane %v708_v59, 2 }
 0x232   : > { %v710_v61 = vmax.f32 %v708_v59, %v709_v60 }
 0x234   : > { %v711_v62 = vrot.slane %v710_v61, 1 }
 0x236   : > { %v712_v63 = vmax.f32 %v710_v61, %v711_v62 }
 0x238   : > { %v713_v2 = vsub.f32 %v704_v55, %v712_v63 }
 0x23a   : > { %v714_v3 = vmul.f32 1.442695, %v713_v2 }
 0x23c   : > { %1435 = vpow2.f32 %v714_v3 }
 0x246   : > { %v1436_v4 = vpop.eup %1435 }
 0x247   : > { %v716_v5 = vsel %vm705_vm3, %v1436_v4, 0.0 }
 0x248   : > { %v717_v6 = vrot.slane %v716_v5, 4 }
 0x24a   : > { %v718_v7 = vadd.f32 %v717_v6, %v716_v5 }
 0x24c   : > { %v719_v8 = vrot.slane %v718_v7, 2 }
 0x24e   : > { %v720_v9 = vadd.f32 %v719_v8, %v718_v7 }
 0x250   : > { %v721_v10 = vrot.slane %v720_v9, 1 }
 0x252   : > { %v722_v11 = vadd.f32 %v721_v10, %v720_v9 }
 0x254   : > { %1437 = vrcp.f32 %v722_v11 }
 0x25e   : > { %v1438_v12 = vpop.eup %1437 }
 0x25f   : > { %v724_v13 = vmul.f32 %v1438_v12, %v1436_v4 }
 0x261   : > { %1227 = vmatmul.mubr.msk.f32.vlgmr.msra.gmra.mrb[2].mxu1 %vm705_vm3, %v724_v13  ;;  %v809_v17 = vsel %vm705_vm3, %v724_v13, 0.0 }
 0x262   : > { %810 = vadd.xlane.f32.xlu1 %v809_v17  ;;  %1261 = vmatprep.mubr.msk.f32.mxu1 %vm1609_vm0, %v1607_v0  ;;  %v819_v0 = vld [vmem:[%s2074_s3 + $0x20] sm:$0xff] }
 0x263   : > { %1346 = vmatpush3.bf16.msra.mxu1 %v1345_v21  ;;  %v1351_v25 = vpack.c.bf16 %v820_v24, %v819_v0 }
 0x264   : > { %1347 = vmatprep.subr.bf16.mxu1 %v1608_v1 }
 0x267   : > { %1349 = vmatpush3.bf16.msra.mxu1 %v1348_v23 }
 0x268   : > { %1350 = vmatprep.subr.bf16.mxu1 %v1608_v1 }
 0x26b   : > { %1352 = vmatpush3.bf16.msra.mxu1 %v1351_v25 }
 0x26c   : > { %1353 = vmatprep.subr.bf16.mxu1 %v1608_v1 }
 0x26f   : > { %1355 = vmatpush3.bf16.msra.mxu1 %v1354_v28 }
 0x270   : > { %1356 = vmatprep.subr.bf16.mxu1 %v1608_v1 }
 0x273   : > { %1358 = vmatpush3.bf16.msra.mxu1 %v1357_v33 }
 0x274   : > { %1359 = vmatprep.subr.bf16.mxu1 %v1608_v1 }
 0x277   : > { %1361 = vmatpush3.bf16.msra.mxu1 %v1360_v36 }
 0x278   : > { %1362 = vmatprep.subr.bf16.mxu1 %v1608_v1 }
 0x27b   : > { %1364 = vmatpush3.bf16.msra.mxu1 %v1363_v39 }
 0x27c   : > { %1365 = vmatprep.subr.bf16.mxu1 %v1608_v1  ;;  %v605_v1 = vadd.f32 %v604_v29, %v463_v46 }
 0x27f   : > { %1367 = vmatpush3.bf16.msra.mxu1 %v1366_v42 }
 0x2ef   : > { %v811_v43 = vpop.xlane.xlu1 %810 }
 0x2f0   : > { %v813_v44 = vmul.f32 0.25, %v811_v43 }
 0x2f2   : > { %814 = vst [vmem:[%s400_s13] sm:$0xff] %v813_v44 }
 0x334   : > { %v798_v47 = vpop.f32.mrb[2].mxu1 }
 0x335   : > { %v802_v48 = vmul.f32 %v798_v47, %v605_v1  ;;  %v1228_v49 = vpop.f32.mrb[3].mxu1 }
 0x337   : > { %v803_v50 = vrot.slane %v802_v48, 4 }
 0x339   : > { %v804_v51 = vadd.f32 %v803_v50, %v802_v48 }
 0x33b   : > { %v805_v53 = vrot.slane %v804_v51, 2 }
 0x33d   : > { %v806_v54 = vadd.f32 %v805_v53, %v804_v51 }
 0x33f   : > { %v807_v55 = vrot.slane %v806_v54, 1 }
 0x341   : > { %v808_v56 = vadd.f32 %v807_v55, %v806_v54 }
 0x343   : > { %1262 = vmatmul.mubr.f32.vlgmr.msra.gmra.mrb[4].mxu1 %v808_v56 }
 0x416   : > { %v898_v16 = vpop.f32.mrb[4].mxu1 }
 0x417   : > { %v899_v58 = vadd.f32 %v898_v16, %v831_v57  ;;  %v1263_v59 = vpop.f32.mrb[5].mxu1 }
 0x419   : > { %v907_v60 = vrot.slane %v899_v58, %v454_v15 }
 0x41b   : > { %v908_v61 = vadd.f32 %v907_v60, %v1828_v52 }
 0x41d   : > { %909 = vadd.xlane.f32.xlu0 %v908_v61 }
 0x4aa   : > { %v910_v62 = vpop.xlane.xlu0 %909 }
 0x4ab   : > { %v912_v63 = vmul.f32 0.0078125, %v910_v62 }
 0x4ad   : > { %v913_v2 = vsub.f32 %v908_v61, %v912_v63 }
 0x4af   : > { %v914_v3 = vmul.f32 %v913_v2, %v913_v2 }
 0x4b1   : > { %915 = vadd.xlane.f32.xlu0 %v914_v3 }
 0x4b2   : > { %1512 = shalt.err (!%p1509_p7)
}
 0x4b3   : > { %s1513_s13 = scalar_lea.hbm %s1993_s30, 128  ;;  %s1517_s21 = scalar_lea.hbm %s2081_s10, 256 }
 0x4b4   : > { %p1514_p9 = scmp.ne.s32.totalorder %s1993_s30, %s1513_s13  ;;  %p1518_p0 = scmp.lt.u32.totalorder %s1993_s30, %s2081_s10 }
 0x4b5   : > { %p1519_p11 = scmp.lt.u32.totalorder %s1517_s21, %s1513_s13  ;;  %p1521_p4 = scmp.lt.u32.totalorder %s1513_s13, %s1993_s30 }
 0x4b6   : > { %p1515_p2 = pnand %p1514_p9, %p1758_p12 }
 0x4b7   : > { %p1520_p1 = por %p1519_p11, %p1518_p0 }
 0x4b8   : > { %p1516_p5 = pneg %p1515_p2 }
 0x4b9   : > { %p1522_p6 = por %p1521_p4, %p1520_p1 }
 0x4bb   : > { %p1523_p8 = pnand %p1522_p6, %p1516_p5 }
 0x4bd   : > { %1526 = shalt.err (!%p1523_p8)
}
 0x4be   : > { %1375 = dma.vmem_to_hbm [thread:$0]  (%p1758_p12), %s969_s26, 128, %s1993_s30, %s942_s27   ;;  %v1093_v5 = vld [vmem:[%s2076_s5] ss:$0 sm:$0xff] }
 0x4bf   : > { %v1094_v7 = vld [vmem:[%s2077_s6] ss:$0 sm:$0xff]  ;;  %s393_s19 = scalar_lea.vmem [#allocation7], %s1806_s11  ;;  %s2027_s27 = scalar_lea.hbm %s2080_s9, %s1097_s24 }
 0x4c0   : > { %s955_s21 = sshll.u32 %s393_s19, 4  ;;  %s937_s18 = scalar_lea.sflag [#allocation4], %s1803_s29  ;;  %s2029_s21 = int_to_ptr.vmem [resolvable:$true] %s955_s21 }
 0x4c1   : > { %s1527_s23 = scalar_lea.vmem %s2029_s21, 128  ;;  %s1611_s11 = smov [#allocation7]  }
 0x4c2   : > { %p1528_p10 = scmp.ne.s32.totalorder %s2029_s21, %s1527_s23  ;;  %s1531_s28 = sshll.u32 %s1611_s11, 4  ;;  %s1532_s28 = int_to_ptr.vmem [resolvable:$false] %s1531_s28 }
 0x4c3   : > { %s1533_s17 = scalar_lea.vmem %s1532_s28, 256  ;;  %p1534_p7 = scmp.lt.s32.totalorder %s2029_s21, %s1532_s28 }
 0x4c4   : > { %p1529_p13 = pnand %p1528_p10, %p1758_p12  ;;  %p1535_p9 = scmp.lt.s32.totalorder %s1533_s17, %s1527_s23 }
 0x4c6   : > { %p1530_p3 = pneg %p1529_p13  ;;  %p1536_p2 = por %p1535_p9, %p1534_p7 }
 0x4c8   : > { %p1537_p5 = pnand %p1536_p2, %p1530_p3 }
 0x53e   : > { %v916_v52 = vpop.xlane.xlu0 %915 }
 0x53f   : > { %v917_v14 = vmul.f32 0.0078125, %v916_v52 }
 0x541   : > { %v918_v15 = vadd.f32 1e-05, %v917_v14 }
 0x543   : > { %1439 = vrsqrt.f32 %v918_v15 }
 0x54d   : > { %v1440_v4 = vpop.eup %1439 }
 0x54e   : > { %v920_v6 = vmul.f32 %v1440_v4, %v913_v2 }
 0x550   : > { %v927_v8 = vmul.f32 %v1093_v5, %v920_v6 }
 0x552   : > { %v934_v9 = vadd.f32 %v1094_v7, %v927_v8 }
 0x554   : > { %935 = vst [vmem:[%s393_s19] sm:$0xff] %v934_v9 }
 0x555   : > { %1540 = shalt.err (!%p1537_p5)
}
 0x556   : > { %s1541_s29 = scalar_lea.hbm %s2027_s27, 128  ;;  %s1545_s13 = scalar_lea.hbm %s2080_s9, 256 }
 0x557   : > { %p1542_p0 = scmp.ne.s32.totalorder %s2027_s27, %s1541_s29  ;;  %p1546_p4 = scmp.lt.u32.totalorder %s2027_s27, %s2080_s9 }
 0x558   : > { %p1547_p6 = scmp.lt.u32.totalorder %s1545_s13, %s1541_s29  ;;  %p1549_p10 = scmp.lt.u32.totalorder %s1541_s29, %s2027_s27 }
 0x559   : > { %p1543_p11 = pnand %p1542_p0, %p1758_p12 }
 0x55a   : > { %p1548_p8 = por %p1547_p6, %p1546_p4 }
 0x55b   : > { %p1544_p1 = pneg %p1543_p11 }
 0x55c   : > { %p1550_p13 = por %p1549_p10, %p1548_p8 }
 0x55e   : > { %p1551_p3 = pnand %p1550_p13, %p1544_p1 }
 0x560   : > { %1554 = shalt.err (!%p1551_p3)
}
 0x561   : > { %1374 = dma.vmem_to_hbm [thread:$0]  (%p1758_p12), %s2029_s21, 128, %s2027_s27, %s937_s18  }
 0x562 PF: > { %s2103_s30 = sld [smem:[#allocation14_spill]]  ;;  %s2104_s26 = sld [smem:[#allocation15_spill]] }
 0x563   : > { %p2106_p9 = scmp.ge.s32.totalorder %s1601_s16, 2 }
 0x568   : > { %s980_s23 = sand.u32 1, %s2103_s30   ;;  %p2105_p7 = scmp.ne.s32.totalorder %s2104_s26, 0 }
 0x569   : > { %s981_s11 = scalar_lea.sflag [#allocation4], %s980_s23 }
 0x56a   : > { %p1387_p2 = pnand %p2106_p9, %p2105_p7 }
 0x56c   : > { %1580 = dma.done.wait (!%p1387_p2), %s981_s11, 128  }
 0x56d   : > { %1582 = vsyncadd (!%p1387_p2), %s981_s11, 4294967168  ;;  %s990_s28 = scalar_lea.sflag [#allocation9], %s980_s23 }
 0x56e   : > { %1584 = dma.done.wait (!%p1387_p2), %s990_s28, 128  }
 0x56f   : > { %1586 = vsyncadd (!%p1387_p2), %s990_s28, 4294967168  ;;  %s2107_s16 = sld [smem:[#allocation16_spill]]  ;;  %s2108_s13 = smov %s1593_s14 }
 0x570   : > { %s2109_s14 = smov %s1597_s15  ;;  %s2110_s15 = smov %s1754_s25 }
 0x575   : > { %p28_p12 = scmp.ge.s32.totalorder %s2107_s16, 4  }
 0x577   :  { %30 = sbr.rel (!%p28_p12) target bundleno = 8 (0x8), region = 122 }
 0x57e   :  { %995 = vsyncpa [#allocation3], 1 }
 0x57f   :  { %997 = vsyncpa [#allocation3 + $0x1], 1 }
 0x580   :  { %998 = vsyncpa [#allocation6], 1 }
 0x581   :  { %999 = vsyncpa [#allocation4], 1 }
 0x582   :  { %1001 = vsyncpa [#allocation4 + $0x1], 1 }
 0x583   :  { %1002 = vsyncpa [#allocation9], 1 }
 0x584   :  { %1004 = vsyncpa [#allocation9 + $0x1], 1 }

</bundles_post_ra>
